<compile_context>
chip_gen: v6e
topology: v6e:2x2x1
jax: 0.10.0
libtpu: 0.0.40
codegen_flags: <defaults>
</compile_context>

<pallas_src>
import jax
import jax.numpy as jnp
from jax.experimental import pallas as pl
from jax.experimental.pallas import tpu as pltpu


def _mlp3_kernel(x_ref, y_ref, w0x_ref, w0y_ref, b0_ref,
                 w1_ref, b1_ref, w2_ref, b2_ref, o_ref):
    """Fused 3-layer MLP (Linear+ReLU, Linear+ReLU, Linear) on a row tile.

    The wrapper packs PACK original rows per kernel row; every weight here is the
    corresponding block-diagonal expansion and every bias is lane-tiled, so the
    math below is unchanged -- it just runs on lane-dense (tile, 128) operands and
    the final store is a full-width vst.  Layer 0 consumes context_x / context_y
    separately with a split weight, which equals concat([x, y]) @ W0 without
    materializing the concatenation in HBM.  All operands and accumulation are f32.
    """
    h = jnp.dot(x_ref[...], w0x_ref[...], preferred_element_type=jnp.float32)
    h = h + jnp.dot(y_ref[...], w0y_ref[...], preferred_element_type=jnp.float32)
    h = jnp.maximum(h + b0_ref[...], 0.0)

    h = jnp.dot(h, w1_ref[...], preferred_element_type=jnp.float32)
    h = jnp.maximum(h + b1_ref[...], 0.0)

    h = jnp.dot(h, w2_ref[...], preferred_element_type=jnp.float32)
    o_ref[...] = (h + b2_ref[...]).astype(o_ref.dtype)


def _round_up(n, m):
    return ((n + m - 1) // m) * m


def _block_diag(w, k):
    """(din, dout) -> (k*din, k*dout) block-diagonal replication (k copies)."""
    if k == 1:
        return w
    din, dout = w.shape
    out = jnp.zeros((k * din, k * dout), w.dtype)
    for j in range(k):
        out = out.at[j * din:(j + 1) * din, j * dout:(j + 1) * dout].set(w)
    return out


def _choose_pack(d_out, widest_hidden):
    """How many original rows to pack along the lane axis (lane-dense output)."""
    if d_out >= 128 or 128 % d_out != 0:
        return 1
    pack = 128 // d_out
    # Packing multiplies weight footprint / MXU work by `pack`; it only pays off
    # while the packed hidden width stays small -- exactly the regime where the
    # un-packed store would have been badly lane-masked anyway.
    while pack > 1 and pack * widest_hidden > 512:
        pack //= 2
    return pack


def _choose_tile(n_rows, tile_max, min_tiles=4):
    """Packed-row tile: big enough to amortize the ~0.35us per-step cost, but with
    >= min_tiles grid steps when possible so the 'parallel' axis gives the second
    v7x TensorCore work.  Returns either a multiple of 8 or the full row count."""
    t = min(tile_max, _round_up(pl.cdiv(n_rows, min_tiles), 8))
    if t >= n_rows:
        return n_rows            # single full-array block (exempt from /8 rule)
    return t


def init_encoder_params(key, output_sizes):
    """Deterministic synthetic weights. Weights stored as (in, out) so the kernel
    computes x @ W + b (equivalent to torch Linear's x @ W.T + b)."""
    assert len(output_sizes) == 4, "this script fuses exactly 3 linear layers"
    params = []
    for i in range(len(output_sizes) - 1):
        d_in, d_out = output_sizes[i], output_sizes[i + 1]
        key, kw, kb = jax.random.split(key, 3)
        w = jax.random.normal(kw, (d_in, d_out), jnp.float32) * 0.1
        b = jax.random.normal(kb, (1, d_out), jnp.float32) * 0.01
        params.append((w, b))
    return params


def cnp_deterministic_encoder_contrastive(context_x, context_y, target_x, params,
                                          mask=None, *, row_tile=4096,
                                          out_dtype=jnp.float32):
    """Pallas forward of CNPDeterministicEncoder_contrastive (3 fused linears).

    `out_dtype=jnp.bfloat16` halves the dominant HBM writeback stream if the
    consumer tolerates it; default is f32 for parity with the reference.
    """
    del target_x, mask  # accepted but unused by the reference forward
    B, S, d_x = context_x.shape
    d_y = context_y.shape[-1]
    N = B * S

    (w0, b0), (w1, b1), (w2, b2) = params
    h0, h1, d_out = w0.shape[1], w1.shape[1], w2.shape[1]
    assert w0.shape[0] == d_x + d_y and w1.shape[0] == h0 and w2.shape[0] == h1

    pack = _choose_pack(d_out, max(h0, h1, d_out))

    # --- pad row count to a multiple of `pack` (usually a no-op) ----------------
    n_rows = _round_up(N, pack)
    x = context_x.reshape(N, d_x).astype(jnp.float32)
    y = context_y.reshape(N, d_y).astype(jnp.float32)
    if n_rows != N:
        x = jnp.pad(x, ((0, n_rows - N), (0, 0)))
        y = jnp.pad(y, ((0, n_rows - N), (0, 0)))
    n_packed = n_rows // pack

    # --- pack `pack` rows per lane-dense kernel row (row-major => free in XLA) --
    xp = x.reshape(n_packed, pack * d_x)
    yp = y.reshape(n_packed, pack * d_y)

    # Split layer-0 weight (no HBM concat of the encoder input), block-diagonal
    # expansion for the packed layout, lane-tiled biases.  Everything stays f32.
    w0f = w0.astype(jnp.float32)
    w0x = _block_diag(w0f[:d_x], pack)
    w0y = _block_diag(w0f[d_x:], pack)
    w1p = _block_diag(w1.astype(jnp.float32), pack)
    w2p = _block_diag(w2.astype(jnp.float32), pack)
    b0p = jnp.tile(b0.reshape(1, h0).astype(jnp.float32), (1, pack))
    b1p = jnp.tile(b1.reshape(1, h1).astype(jnp.float32), (1, pack))
    b2p = jnp.tile(b2.reshape(1, d_out).astype(jnp.float32), (1, pack))

    tile_max = max(_round_up(max(row_tile, 8) // pack, 8), 8)
    tile = _choose_tile(n_packed, tile_max)
    n_tiles = pl.cdiv(n_packed, tile)  # trailing partial block: Pallas masks OOB writes

    const = lambda i: (0, 0)  # weights/biases: VMEM-resident, never re-fetched

    flops = 2 * N * ((d_x + d_y) * h0 + h0 * h1 + h1 * d_out)
    bytes_accessed = 4 * (N * (d_x + d_y) + N * d_out
                          + w0.size + w1.size + w2.size
                          + b0.size + b1.size + b2.size)
    cost = pl.CostEstimate(flops=flops, transcendentals=0,
                           bytes_accessed=bytes_accessed)

    out = pl.pallas_call(
        _mlp3_kernel,
        out_shape=jax.ShapeDtypeStruct((n_packed, pack * d_out), out_dtype),
        grid_spec=pltpu.PrefetchScalarGridSpec(
            num_scalar_prefetch=0,
            grid=(n_tiles,),
            in_specs=[
                pl.BlockSpec((tile, pack * d_x), lambda i: (i, 0)),
                pl.BlockSpec((tile, pack * d_y), lambda i: (i, 0)),
                pl.BlockSpec(w0x.shape, const), pl.BlockSpec(w0y.shape, const),
                pl.BlockSpec(b0p.shape, const),
                pl.BlockSpec(w1p.shape, const), pl.BlockSpec(b1p.shape, const),
                pl.BlockSpec(w2p.shape, const), pl.BlockSpec(b2p.shape, const),
            ],
            out_specs=pl.BlockSpec((tile, pack * d_out), lambda i: (i, 0)),
        ),
        compiler_params=pltpu.CompilerParams(dimension_semantics=("parallel",)),
        cost_estimate=cost,
    )(xp, yp, w0x, w0y, b0p, w1p, b1p, w2p, b2p)

    out = out.reshape(n_rows, d_out)      # row-major unpack: free in XLA
    if n_rows != N:
        out = out[:N]
    return out.reshape(B, S, d_out)


def _reference(context_x, context_y, params):
    """Pure-JAX f32 reference mirroring the PyTorch forward."""
    x = jnp.concatenate([context_x, context_y], axis=-1)
    B, S, _ = x.shape
    h = x.reshape(B * S, -1)
    n = len(params)
    for i, (w, b) in enumerate(params):
        h = h @ w + b
        if i < n - 1:
            h = jnp.maximum(h, 0.0)
    return h.reshape(B, S, -1)


if __name__ == "__main__":
    key = jax.random.PRNGKey(0)
    k_x, k_y, k_t, k_p = jax.random.split(key, 4)

    batch, set_size, d_x, d_y = 2, 8, 3, 3
    hidden = 32
    output_sizes = [d_x + d_y, hidden, hidden, hidden]

    context_x = jax.random.normal(k_x, (batch, set_size, d_x), jnp.float32)
    context_y = jax.random.normal(k_y, (batch, set_size, d_y), jnp.float32)
    target_x = jax.random.normal(k_t, (batch, set_size, d_x), jnp.float32)  # unused

    params = init_encoder_params(k_p, output_sizes)

    out = cnp_deterministic_encoder_contrastive(context_x, context_y, target_x, params)
    out = jax.block_until_ready(out)

    ref = _reference(context_x, context_y, params)
    assert out.shape == (batch, set_size, hidden), out.shape
    # All-f32 math on both paths -> tight tolerance (only dot-order differences).
    assert jnp.allclose(out, ref, atol=2e-3, rtol=2e-3), \
        float(jnp.max(jnp.abs(out - ref)))

    print("KERNEL_OK")
</pallas_src>

<mosaic_0001>
module attributes {stable_mosaic.version = 11 : i64} {
  func.func @_mlp3_kernel(%arg0: i32, %arg1: memref<4x12xf32, #tpu.memory_space<vmem>>, %arg2: memref<4x12xf32, #tpu.memory_space<vmem>>, %arg3: memref<12x128xf32, #tpu.memory_space<vmem>>, %arg4: memref<12x128xf32, #tpu.memory_space<vmem>>, %arg5: memref<1x128xf32, #tpu.memory_space<vmem>>, %arg6: memref<128x128xf32, #tpu.memory_space<vmem>>, %arg7: memref<1x128xf32, #tpu.memory_space<vmem>>, %arg8: memref<128x128xf32, #tpu.memory_space<vmem>>, %arg9: memref<1x128xf32, #tpu.memory_space<vmem>>, %arg10: memref<4x128xf32, #tpu.memory_space<vmem>>) attributes {dimension_semantics = [#tpu.dimension_semantics<parallel>], iteration_bounds = array<i64: 1>, scalar_prefetch = 0 : i64, scratch_operands = 0 : i64, tpu.core_type = #tpu.core_type<tc>, window_params = [{transform_indices = @transform_0, window_bounds = array<i64: 4, 12>}, {transform_indices = @transform_1, window_bounds = array<i64: 4, 12>}, {pipeline_mode = #tpu.pipeline_mode<synchronous>, transform_indices = @transform_2, window_bounds = array<i64: 12, 128>}, {pipeline_mode = #tpu.pipeline_mode<synchronous>, transform_indices = @transform_3, window_bounds = array<i64: 12, 128>}, {pipeline_mode = #tpu.pipeline_mode<synchronous>, transform_indices = @transform_4, window_bounds = array<i64: 1, 128>}, {pipeline_mode = #tpu.pipeline_mode<synchronous>, transform_indices = @transform_5, window_bounds = array<i64: 128, 128>}, {pipeline_mode = #tpu.pipeline_mode<synchronous>, transform_indices = @transform_6, window_bounds = array<i64: 1, 128>}, {pipeline_mode = #tpu.pipeline_mode<synchronous>, transform_indices = @transform_7, window_bounds = array<i64: 128, 128>}, {pipeline_mode = #tpu.pipeline_mode<synchronous>, transform_indices = @transform_8, window_bounds = array<i64: 1, 128>}, {transform_indices = @transform_9, window_bounds = array<i64: 4, 128>}]} {
    %c0 = arith.constant 0 : index
    %c0_0 = arith.constant 0 : index
    %0 = vector.load %arg1[%c0, %c0_0] : memref<4x12xf32, #tpu.memory_space<vmem>>, vector<4x12xf32>
    %c0_1 = arith.constant 0 : index
    %c0_2 = arith.constant 0 : index
    %1 = vector.load %arg3[%c0_1, %c0_2] : memref<12x128xf32, #tpu.memory_space<vmem>>, vector<12x128xf32>
    %cst = arith.constant dense<0.000000e+00> : vector<4x128xf32>
    %2 = tpu.matmul %0, %1, %cst {dimension_numbers = #tpu.dot_dimension_numbers<[1], [0], [0], [1], [0, 0, 1, 1], [], []>} : vector<4x12xf32>, vector<12x128xf32>, vector<4x128xf32> -> vector<4x128xf32>
    %c0_3 = arith.constant 0 : index
    %c0_4 = arith.constant 0 : index
    %3 = vector.load %arg2[%c0_3, %c0_4] : memref<4x12xf32, #tpu.memory_space<vmem>>, vector<4x12xf32>
    %c0_5 = arith.constant 0 : index
    %c0_6 = arith.constant 0 : index
    %4 = vector.load %arg4[%c0_5, %c0_6] : memref<12x128xf32, #tpu.memory_space<vmem>>, vector<12x128xf32>
    %cst_7 = arith.constant dense<0.000000e+00> : vector<4x128xf32>
    %5 = tpu.matmul %3, %4, %cst_7 {dimension_numbers = #tpu.dot_dimension_numbers<[1], [0], [0], [1], [0, 0, 1, 1], [], []>} : vector<4x12xf32>, vector<12x128xf32>, vector<4x128xf32> -> vector<4x128xf32>
    %6 = arith.addf %2, %5 : vector<4x128xf32>
    %c0_8 = arith.constant 0 : index
    %c0_9 = arith.constant 0 : index
    %7 = vector.load %arg5[%c0_8, %c0_9] : memref<1x128xf32, #tpu.memory_space<vmem>>, vector<1x128xf32>
    %8 = vector.broadcast %7 : vector<1x128xf32> to vector<4x128xf32>
    %9 = arith.addf %6, %8 : vector<4x128xf32>
    %cst_10 = arith.constant 0.000000e+00 : f32
    %10 = vector.broadcast %cst_10 : f32 to vector<4x128xf32>
    %11 = arith.maximumf %9, %10 : vector<4x128xf32>
    %c0_11 = arith.constant 0 : index
    %c0_12 = arith.constant 0 : index
    %12 = vector.load %arg6[%c0_11, %c0_12] : memref<128x128xf32, #tpu.memory_space<vmem>>, vector<128x128xf32>
    %cst_13 = arith.constant dense<0.000000e+00> : vector<4x128xf32>
    %13 = tpu.matmul %11, %12, %cst_13 {dimension_numbers = #tpu.dot_dimension_numbers<[1], [0], [0], [1], [0, 0, 1, 1], [], []>} : vector<4x128xf32>, vector<128x128xf32>, vector<4x128xf32> -> vector<4x128xf32>
    %c0_14 = arith.constant 0 : index
    %c0_15 = arith.constant 0 : index
    %14 = vector.load %arg7[%c0_14, %c0_15] : memref<1x128xf32, #tpu.memory_space<vmem>>, vector<1x128xf32>
    %15 = vector.broadcast %14 : vector<1x128xf32> to vector<4x128xf32>
    %16 = arith.addf %13, %15 : vector<4x128xf32>
    %cst_16 = arith.constant 0.000000e+00 : f32
    %17 = vector.broadcast %cst_16 : f32 to vector<4x128xf32>
    %18 = arith.maximumf %16, %17 : vector<4x128xf32>
    %c0_17 = arith.constant 0 : index
    %c0_18 = arith.constant 0 : index
    %19 = vector.load %arg8[%c0_17, %c0_18] : memref<128x128xf32, #tpu.memory_space<vmem>>, vector<128x128xf32>
    %cst_19 = arith.constant dense<0.000000e+00> : vector<4x128xf32>
    %20 = tpu.matmul %18, %19, %cst_19 {dimension_numbers = #tpu.dot_dimension_numbers<[1], [0], [0], [1], [0, 0, 1, 1], [], []>} : vector<4x128xf32>, vector<128x128xf32>, vector<4x128xf32> -> vector<4x128xf32>
    %c0_20 = arith.constant 0 : index
    %c0_21 = arith.constant 0 : index
    %21 = vector.load %arg9[%c0_20, %c0_21] : memref<1x128xf32, #tpu.memory_space<vmem>>, vector<1x128xf32>
    %22 = vector.broadcast %21 : vector<1x128xf32> to vector<4x128xf32>
    %23 = arith.addf %20, %22 : vector<4x128xf32>
    %c0_22 = arith.constant 0 : index
    %c0_23 = arith.constant 0 : index
    %24 = vector.load %arg10[%c0_22, %c0_23] : memref<4x128xf32, #tpu.memory_space<vmem>>, vector<4x128xf32>
    tpu.vector_store %arg10[%c0_22, %c0_23], %23 {strides = array<i32>} : memref<4x128xf32, #tpu.memory_space<vmem>>, vector<4x128xf32>,
    return
  }
  func.func @transform_0(%arg0: i32) -> (i32, i32) {
    %c0_i32 = arith.constant 0 : i32
    %c0_i32_0 = arith.constant 0 : i32
    return %arg0, %c0_i32 : i32, i32
  }
  func.func @transform_1(%arg0: i32) -> (i32, i32) {
    %c0_i32 = arith.constant 0 : i32
    %c0_i32_0 = arith.constant 0 : i32
    return %arg0, %c0_i32 : i32, i32
  }
  func.func @transform_2(%arg0: i32) -> (i32, i32) {
    %c0_i32 = arith.constant 0 : i32
    %c0_i32_0 = arith.constant 0 : i32
    %c0_i32_1 = arith.constant 0 : i32
    return %c0_i32, %c0_i32_0 : i32, i32
  }
  func.func @transform_3(%arg0: i32) -> (i32, i32) {
    %c0_i32 = arith.constant 0 : i32
    %c0_i32_0 = arith.constant 0 : i32
    %c0_i32_1 = arith.constant 0 : i32
    return %c0_i32, %c0_i32_0 : i32, i32
  }
  func.func @transform_4(%arg0: i32) -> (i32, i32) {
    %c0_i32 = arith.constant 0 : i32
    %c0_i32_0 = arith.constant 0 : i32
    %c0_i32_1 = arith.constant 0 : i32
    return %c0_i32, %c0_i32_0 : i32, i32
  }
  func.func @transform_5(%arg0: i32) -> (i32, i32) {
    %c0_i32 = arith.constant 0 : i32
    %c0_i32_0 = arith.constant 0 : i32
    %c0_i32_1 = arith.constant 0 : i32
    return %c0_i32, %c0_i32_0 : i32, i32
  }
  func.func @transform_6(%arg0: i32) -> (i32, i32) {
    %c0_i32 = arith.constant 0 : i32
    %c0_i32_0 = arith.constant 0 : i32
    %c0_i32_1 = arith.constant 0 : i32
    return %c0_i32, %c0_i32_0 : i32, i32
  }
  func.func @transform_7(%arg0: i32) -> (i32, i32) {
    %c0_i32 = arith.constant 0 : i32
    %c0_i32_0 = arith.constant 0 : i32
    %c0_i32_1 = arith.constant 0 : i32
    return %c0_i32, %c0_i32_0 : i32, i32
  }
  func.func @transform_8(%arg0: i32) -> (i32, i32) {
    %c0_i32 = arith.constant 0 : i32
    %c0_i32_0 = arith.constant 0 : i32
    %c0_i32_1 = arith.constant 0 : i32
    return %c0_i32, %c0_i32_0 : i32, i32
  }
  func.func @transform_9(%arg0: i32) -> (i32, i32) {
    %c0_i32 = arith.constant 0 : i32
    %c0_i32_0 = arith.constant 0 : i32
    return %arg0, %c0_i32 : i32, i32
  }
}

</mosaic_0001>

<bundles_post_ra>
// kernel: tpu_custom_call.1
= control target key start
LH: loop header
LB: loop body
LE: loop exit
PB: predicated region body
PF: predicated region fallthrough
CT: control target
= control target key end

     0   :  { %14 = vsyncpa [#allocation3], 0  ;;  %s925_s0 = inlined_call_operand.hbm [shape: f32[4,12], index: 0, kind: input, shape index: {}]   ;;  %s926_s1 = inlined_call_operand.hbm [shape: f32[4,12], index: 1, kind: input, shape index: {}]   ;;  %s927_s2 = inlined_call_operand.hbm [shape: f32[12,128], index: 2, kind: input, shape index: {}]   ;;  %s928_s3 = inlined_call_operand.hbm [shape: f32[12,128], index: 3, kind: input, shape index: {}]   ;;  %s929_s4 = inlined_call_operand.vmem [shape: f32[1,128], index: 4, kind: input, shape index: {}]   ;;  %s930_s5 = inlined_call_operand.hbm [shape: f32[128,128], index: 5, kind: input, shape index: {}]   ;;  %s931_s6 = inlined_call_operand.vmem [shape: f32[1,128], index: 6, kind: input, shape index: {}]   ;;  %s932_s7 = inlined_call_operand.hbm [shape: f32[128,128], index: 7, kind: input, shape index: {}]   ;;  %s933_s8 = inlined_call_operand.vmem [shape: f32[1,128], index: 8, kind: input, shape index: {}]   ;;  %s934_s9 = inlined_call_operand.hbm [shape: f32[4,128], index: 9, kind: output, shape index: {}]  }
   0x1   :  { %15 = vsyncpa [#allocation6], 0 }
   0x2   :  { %16 = vsyncpa [#allocation9], 0 }
   0x3   :  { %17 = vsyncpa [#allocation12], 0 }
   0x4   :  { %18 = vsyncpa [#allocation4], 0  ;;  %s778_s30 = smov [#allocation5]  }
   0x5   :  { %s35_s10 = sshll.u32 %s778_s30, 4  ;;  %s36_s10 = int_to_ptr.vmem [resolvable:$true] %s35_s10 }
   0x6   :  { %s636_s11 = scalar_lea.vmem %s36_s10, 64  ;;  %p641_p1 = scmp.lt.s32.totalorder %s36_s10, %s36_s10 }
   0x7   :  { %p637_p0 = scmp.ne.s32.totalorder %s36_s10, %s636_s11  ;;  %p642_p2 = scmp.lt.s32.totalorder %s636_s11, %s636_s11 }
   0x9   :  { %p643_p3 = por %p642_p2, %p641_p1 }
   0xb   :  { %p644_p4 = pnand %p643_p3, %p637_p0 }
   0xd   :  { %647 = shalt.err (!%p644_p4)
}
   0xe   :  { %38 = dma.hbm_to_vmem [thread:$0]  %s926_s1, 64, %s36_s10, [#allocation6]  }
   0xf   :  { %s779_s14 = smov [#allocation8]   ;;  %s780_s16 = smov [#allocation2]  }
  0x10   :  { %s56_s15 = sshll.u32 %s779_s14, 4  ;;  %s25_s17 = sshll.u32 %s780_s16, 4  ;;  %s57_s15 = int_to_ptr.vmem [resolvable:$true] %s56_s15  ;;  %s26_s17 = int_to_ptr.vmem [resolvable:$true] %s25_s17 }
  0x11   :  { %s656_s18 = scalar_lea.vmem %s57_s15, 256  ;;  %p661_p6 = scmp.lt.s32.totalorder %s57_s15, %s57_s15 }
  0x12   :  { %p657_p5 = scmp.ne.s32.totalorder %s57_s15, %s656_s18  ;;  %p662_p7 = scmp.lt.s32.totalorder %s656_s18, %s656_s18 }
  0x14   :  { %p663_p8 = por %p662_p7, %p661_p6 }
  0x16   :  { %p664_p9 = pnand %p663_p8, %p657_p5 }
  0x18   :  { %667 = shalt.err (!%p664_p9)
}
  0x19   :  { %s781_s19 = smov 128   ;;  %s782_s20 = smov 8  }
  0x1a   :  { %62 = dma.hbm_to_vmem [thread:$0]  %s928_s3, 256, %s57_s15, [#allocation9], %s781_s19, %s781_s19, %s782_s20  }
  0x1b   :  { %s676_s1 = scalar_lea.vmem %s26_s17, 64  ;;  %p681_p11 = scmp.lt.s32.totalorder %s26_s17, %s26_s17 }
  0x1c   :  { %p677_p10 = scmp.ne.s32.totalorder %s26_s17, %s676_s1  ;;  %p682_p12 = scmp.lt.s32.totalorder %s676_s1, %s676_s1 }
  0x1e   :  { %p683_p13 = por %p682_p12, %p681_p11 }
  0x20   :  { %p684_p0 = pnand %p683_p13, %p677_p10 }
  0x22   :  { %687 = shalt.err (!%p684_p0)
}
  0x23   :  { %28 = dma.hbm_to_vmem [thread:$0]  %s925_s0, 64, %s26_s17, [#allocation3]  }
  0x24   :  { %s783_s25 = smov [#allocation7]   ;;  %s784_s27 = smov [#allocation10]  }
  0x25   :  { %s44_s26 = sshll.u32 %s783_s25, 4  ;;  %s70_s28 = sshll.u32 %s784_s27, 4  ;;  %s45_s26 = int_to_ptr.vmem [resolvable:$true] %s44_s26  ;;  %s71_s28 = int_to_ptr.vmem [resolvable:$true] %s70_s28 }
  0x26   :  { %s696_s29 = scalar_lea.vmem %s45_s26, 256  ;;  %p701_p2 = scmp.lt.s32.totalorder %s45_s26, %s45_s26 }
  0x27   :  { %p697_p1 = scmp.ne.s32.totalorder %s45_s26, %s696_s29  ;;  %p702_p3 = scmp.lt.s32.totalorder %s696_s29, %s696_s29 }
  0x29   :  { %p703_p4 = por %p702_p3, %p701_p2 }
  0x2b   :  { %p704_p5 = pnand %p703_p4, %p697_p1 }
  0x2d   :  { %707 = shalt.err (!%p704_p5)
}
  0x2e   :  { %50 = dma.hbm_to_vmem [thread:$0]  %s927_s2, 256, %s45_s26, [#allocation6], %s781_s19, %s781_s19, %s782_s20  }
  0x2f   :  { %s716_s0 = scalar_lea.vmem %s71_s28, 2048  ;;  %p721_p7 = scmp.lt.s32.totalorder %s71_s28, %s71_s28 }
  0x30   :  { %p717_p6 = scmp.ne.s32.totalorder %s71_s28, %s716_s0  ;;  %p722_p8 = scmp.lt.s32.totalorder %s716_s0, %s716_s0 }
  0x32   :  { %p723_p9 = por %p722_p8, %p721_p7 }
  0x34   :  { %p724_p10 = pnand %p723_p9, %p717_p6 }
  0x36   :  { %727 = shalt.err (!%p724_p10)
}
  0x37   :  { %76 = dma.hbm_to_vmem [thread:$0]  %s930_s5, 2048, %s71_s28, [#allocation9], %s781_s19, %s781_s19, %s782_s20  }
  0x38   :  { %s785_s12 = smov [#allocation11]  }
  0x39   :  { %s84_s13 = sshll.u32 %s785_s12, 4  ;;  %s85_s13 = int_to_ptr.vmem [resolvable:$true] %s84_s13 }
  0x3a   :  { %s736_s14 = scalar_lea.vmem %s85_s13, 2048  ;;  %p741_p12 = scmp.lt.s32.totalorder %s85_s13, %s85_s13 }
  0x3b   :  { %p737_p11 = scmp.ne.s32.totalorder %s85_s13, %s736_s14  ;;  %p742_p13 = scmp.lt.s32.totalorder %s736_s14, %s736_s14 }
  0x3d   :  { %p743_p0 = por %p742_p13, %p741_p12 }
  0x3f   :  { %p744_p1 = pnand %p743_p0, %p737_p11 }
  0x41   :  { %747 = shalt.err (!%p744_p1)
}
  0x42   :  { %90 = dma.hbm_to_vmem [thread:$0]  %s932_s7, 2048, %s85_s13, [#allocation12], %s781_s19, %s781_s19, %s782_s20  }
  0x43   :  { %768 = dma.done.wait [#allocation3], 64  }
  0x44   :  { %769 = vsyncadd [#allocation3], 4294967232 }
  0x45   :  { %770 = dma.done.wait [#allocation6], 320  }
  0x46   :  { %771 = vsyncadd [#allocation6], 4294966976 }
  0x47   :  { %772 = dma.done.wait [#allocation9], 2304  }
  0x48   :  { %773 = vsyncadd [#allocation9], 4294964992 }
  0x49   :  { %774 = dma.done.wait [#allocation12], 2048  }
  0x4a   :  { %775 = vsyncadd [#allocation12], 4294965248  ;;  %v786_v0 = vmov 0.0   ;;  %vm787_vm0 = vmmov 0   ;;  %vm121_vm1 = vcmask 1043456   ;;  %v115_v3 = vld [vmem:[#allocation8] sm:$0xff] }
  0x4b   :  { %533 = vmatprep.subr.mxu0 %v786_v0  ;;  %540 = vmatprep.subr.mxu1 %v786_v0  ;;  %v116_v1 = vld [vmem:[#allocation8 + $0x8] sm:$0xf]  ;;  %v113_v2 = vld [vmem:[#allocation7 + $0x8] sm:$0xf]  ;;  %v112_v4 = vld [vmem:[#allocation7] sm:$0xff]  ;;  %vm117_vm2 = vcmask 97280  }
  0x4c   :  { %537 = vmatprep.mubr.msk.f32.mxu0 %vm787_vm0, %v786_v0  ;;  %544 = vmatprep.mubr.msk.f32.mxu1 %vm787_vm0, %v786_v0  ;;  %v114_v5 = vld [vmem:[#allocation5] sm:$0xf]  ;;  %v111_v6 = vld [vmem:[#allocation2] sm:$0xf]  ;;  %v294_v8 = vld [vmem:[#allocation10 + $0x70] sm:$0xff]  ;;  %s788_s19 = smov [#allocation13]  }
  0x4d   :  { %534 = vmatpush3.msk.msra.mxu0 %vm121_vm1, %v116_v1  ;;  %541 = vmatpush3.msk.msra.mxu1 %vm121_vm1, %v113_v2  ;;  %v295_v7 = vld [vmem:[#allocation10 + $0x78] sm:$0xff]  ;;  %v293_v9 = vld [vmem:[#allocation10 + $0x68] sm:$0xff]  ;;  %v292_v10 = vld [vmem:[#allocation10 + $0x60] sm:$0xff]  ;;  %s474_s20 = sshll.u32 %s788_s19, 4  ;;  %s475_s20 = int_to_ptr.vmem [resolvable:$true] %s474_s20 }
  0x4e   :  { %535 = vmatprep.subr.mxu0 %v786_v0  ;;  %542 = vmatprep.subr.mxu1 %v786_v0  ;;  %v291_v11 = vld [vmem:[#allocation10 + $0x58] sm:$0xff]  ;;  %v290_v12 = vld [vmem:[#allocation10 + $0x50] sm:$0xff]  ;;  %v289_v13 = vld [vmem:[#allocation10 + $0x48] sm:$0xff]  ;;  %s748_s21 = scalar_lea.vmem %s475_s20, 64  ;;  %p753_p3 = scmp.lt.s32.totalorder %s475_s20, %s475_s20 }
  0x4f   :  { %536 = vmatpush3.msra.mxu0 %v115_v3  ;;  %543 = vmatpush3.msra.mxu1 %v112_v4  ;;  %v288_v14 = vld [vmem:[#allocation10 + $0x40] sm:$0xff]  ;;  %v287_v15 = vld [vmem:[#allocation10 + $0x38] sm:$0xff]  ;;  %v286_v16 = vld [vmem:[#allocation10 + $0x30] sm:$0xff]  ;;  %p749_p2 = scmp.ne.s32.totalorder %s475_s20, %s748_s21  ;;  %p754_p4 = scmp.lt.s32.totalorder %s748_s21, %s748_s21 }
  0x50   :  { %538 = vmatmul.mubr.msk.f32.vlgmr.msra.gmra.mxu0 %vm117_vm2, %v114_v5  ;;  %545 = vmatmul.mubr.msk.f32.vlgmr.msra.gmra.mxu1 %vm117_vm2, %v111_v6  ;;  %v285_v17 = vld [vmem:[#allocation10 + $0x28] sm:$0xff]  ;;  %v284_v18 = vld [vmem:[#allocation10 + $0x20] sm:$0xff]  ;;  %v283_v19 = vld [vmem:[#allocation10 + $0x18] sm:$0xff] }
  0x51   :  { %547 = vmatprep.subr.mxu0 %v786_v0  ;;  %579 = vmatprep.mubr.msk.f32.mxu0 %vm787_vm0, %v786_v0  ;;  %v282_v20 = vld [vmem:[#allocation10 + $0x10] sm:$0xff]  ;;  %v281_v21 = vld [vmem:[#allocation10 + $0x8] sm:$0xff]  ;;  %v280_v22 = vld [vmem:[#allocation10] sm:$0xff]  ;;  %p755_p5 = por %p754_p4, %p753_p3 }
  0x52   :  { %548 = vmatpush3.msra.mxu0 %v295_v7  ;;  %582 = vmatprep.subr.mxu1 %v786_v0  ;;  %v389_v23 = vld [vmem:[#allocation11 + $0x78] sm:$0xff]  ;;  %v388_v24 = vld [vmem:[#allocation11 + $0x70] sm:$0xff]  ;;  %v387_v25 = vld [vmem:[#allocation11 + $0x68] sm:$0xff] }
  0x53   :  { %549 = vmatprep.subr.mxu0 %v786_v0  ;;  %614 = vmatprep.mubr.msk.f32.mxu1 %vm787_vm0, %v786_v0  ;;  %v386_v26 = vld [vmem:[#allocation11 + $0x60] sm:$0xff]  ;;  %v385_v27 = vld [vmem:[#allocation11 + $0x58] sm:$0xff]  ;;  %v384_v28 = vld [vmem:[#allocation11 + $0x50] sm:$0xff]  ;;  %p756_p6 = pnand %p755_p5, %p749_p2 }
  0x54   :  { %550 = vmatpush3.msra.mxu0 %v294_v8  ;;  %583 = vmatpush3.msra.mxu1 %v389_v23  ;;  %v383_v29 = vld [vmem:[#allocation11 + $0x48] sm:$0xff]  ;;  %v382_v30 = vld [vmem:[#allocation11 + $0x40] sm:$0xff]  ;;  %v381_v31 = vld [vmem:[#allocation11 + $0x38] sm:$0xff] }
  0x55   :  { %551 = vmatprep.subr.mxu0 %v786_v0  ;;  %584 = vmatprep.subr.mxu1 %v786_v0  ;;  %v380_v32 = vld [vmem:[#allocation11 + $0x30] sm:$0xff]  ;;  %v379_v33 = vld [vmem:[#allocation11 + $0x28] sm:$0xff]  ;;  %v378_v34 = vld [vmem:[#allocation11 + $0x20] sm:$0xff] }
  0x56   :  { %552 = vmatpush3.msra.mxu0 %v293_v9  ;;  %585 = vmatpush3.msra.mxu1 %v388_v24  ;;  %v377_v35 = vld [vmem:[#allocation11 + $0x18] sm:$0xff]  ;;  %v376_v44 = vld [vmem:[#allocation11 + $0x10] sm:$0xff]  ;;  %v375_v45 = vld [vmem:[#allocation11 + $0x8] sm:$0xff] }
  0x57   :  { %553 = vmatprep.subr.mxu0 %v786_v0  ;;  %586 = vmatprep.subr.mxu1 %v786_v0  ;;  %v490_v38 = vld [vmem:[%s929_s4] ss:$0 sm:$0xff]  ;;  %v374_v46 = vld [vmem:[#allocation11] sm:$0xff] }
  0x58   :  { %554 = vmatpush3.msra.mxu0 %v292_v10  ;;  %587 = vmatpush3.msra.mxu1 %v387_v25  ;;  %v491_v47 = vld [vmem:[%s931_s6] ss:$0 sm:$0xff] }
  0x59   :  { %555 = vmatprep.subr.mxu0 %v786_v0  ;;  %588 = vmatprep.subr.mxu1 %v786_v0  ;;  %v492_v52 = vld [vmem:[%s933_s8] ss:$0 sm:$0xff] }
  0x5a   :  { %556 = vmatpush3.msra.mxu0 %v291_v11  ;;  %589 = vmatpush3.msra.mxu1 %v386_v26 }
  0x5b   :  { %557 = vmatprep.subr.mxu0 %v786_v0  ;;  %590 = vmatprep.subr.mxu1 %v786_v0 }
  0x5c   :  { %558 = vmatpush3.msra.mxu0 %v290_v12  ;;  %591 = vmatpush3.msra.mxu1 %v385_v27 }
  0x5d   :  { %559 = vmatprep.subr.mxu0 %v786_v0  ;;  %592 = vmatprep.subr.mxu1 %v786_v0 }
  0x5e   :  { %560 = vmatpush3.msra.mxu0 %v289_v13  ;;  %593 = vmatpush3.msra.mxu1 %v384_v28 }
  0x5f   :  { %561 = vmatprep.subr.mxu0 %v786_v0  ;;  %594 = vmatprep.subr.mxu1 %v786_v0 }
  0x60   :  { %562 = vmatpush3.msra.mxu0 %v288_v14  ;;  %595 = vmatpush3.msra.mxu1 %v383_v29 }
  0x61   :  { %563 = vmatprep.subr.mxu0 %v786_v0  ;;  %596 = vmatprep.subr.mxu1 %v786_v0 }
  0x62   :  { %564 = vmatpush3.msra.mxu0 %v287_v15  ;;  %597 = vmatpush3.msra.mxu1 %v382_v30 }
  0x63   :  { %565 = vmatprep.subr.mxu0 %v786_v0  ;;  %598 = vmatprep.subr.mxu1 %v786_v0 }
  0x64   :  { %566 = vmatpush3.msra.mxu0 %v286_v16  ;;  %599 = vmatpush3.msra.mxu1 %v381_v31 }
  0x65   :  { %567 = vmatprep.subr.mxu0 %v786_v0  ;;  %600 = vmatprep.subr.mxu1 %v786_v0 }
  0x66   :  { %568 = vmatpush3.msra.mxu0 %v285_v17  ;;  %601 = vmatpush3.msra.mxu1 %v380_v32 }
  0x67   :  { %569 = vmatprep.subr.mxu0 %v786_v0  ;;  %602 = vmatprep.subr.mxu1 %v786_v0 }
  0x68   :  { %570 = vmatpush3.msra.mxu0 %v284_v18  ;;  %603 = vmatpush3.msra.mxu1 %v379_v33 }
  0x69   :  { %571 = vmatprep.subr.mxu0 %v786_v0  ;;  %604 = vmatprep.subr.mxu1 %v786_v0 }
  0x6a   :  { %572 = vmatpush3.msra.mxu0 %v283_v19  ;;  %605 = vmatpush3.msra.mxu1 %v378_v34 }
  0x6b   :  { %573 = vmatprep.subr.mxu0 %v786_v0  ;;  %606 = vmatprep.subr.mxu1 %v786_v0 }
  0x6c   :  { %574 = vmatpush3.msra.mxu0 %v282_v20  ;;  %607 = vmatpush3.msra.mxu1 %v377_v35 }
  0x6d   :  { %575 = vmatprep.subr.mxu0 %v786_v0  ;;  %608 = vmatprep.subr.mxu1 %v786_v0 }
  0x6e   :  { %576 = vmatpush3.msra.mxu0 %v281_v21  ;;  %609 = vmatpush3.msra.mxu1 %v376_v44 }
  0x6f   :  { %577 = vmatprep.subr.mxu0 %v786_v0  ;;  %610 = vmatprep.subr.mxu1 %v786_v0 }
  0x70   :  { %578 = vmatpush3.msra.mxu0 %v280_v22  ;;  %611 = vmatpush3.msra.mxu1 %v375_v45 }
  0x71   :  { %612 = vmatprep.subr.mxu1 %v786_v0 }
  0x72   :  { %613 = vmatpush3.msra.mxu1 %v374_v46 }
 0x110   :  { %v191_v36 = vpop.f32.mrf.mxu0  ;;  %v267_v37 = vpop.f32.mrf.mxu1 }
 0x111   :  { %v268_v39 = vadd.f32 %v267_v37, %v191_v36 }
 0x112   :  { %v539_v40 = vpop.f32.mrf.mxu0  ;;  %v546_v41 = vpop.f32.mrf.mxu1 }
 0x113   :  { %v278_v42 = vadd.f32 %v490_v38, %v268_v39 }
 0x115   :  { %v279_v43 = vmax.f32 %v278_v42, 0.0 }
 0x117   :  { %580 = vmatmul.mubr.f32.vlgmr.msra.gmra.mxu0 %v279_v43 }
 0x1d7   :  { %v369_v48 = vpop.f32.mrf.mxu0 }
 0x1d8   :  { %v370_v49 = vadd.f32 %v491_v47, %v369_v48 }
 0x1d9   :  { %v581_v50 = vpop.f32.mrf.mxu0 }
 0x1da   :  { %v373_v51 = vmax.f32 %v370_v49, 0.0 }
 0x1dc   :  { %615 = vmatmul.mubr.f32.vlgmr.msra.gmra.mxu1 %v373_v51 }
 0x29c   :  { %v463_v53 = vpop.f32.mrf.mxu1 }
 0x29d   :  { %v464_v54 = vadd.f32 %v492_v52, %v463_v53 }
 0x29e   :  { %v616_v55 = vpop.f32.mrf.mxu1 }
 0x29f   :  { %467 = vst [vmem:[#allocation13] sm:$0xf] %v464_v54 }
 0x2a0   :  { %759 = shalt.err (!%p756_p6)
}
 0x2a1   :  { %477 = dma.vmem_to_hbm [thread:$0]  %s475_s20, 64, %s934_s9, [#allocation4]  }
 0x2a2   :  { %776 = dma.done.wait [#allocation4], 64  }
 0x2a3   :  { %777 = vsyncadd [#allocation4], 4294967232 }
 0x2a4   :  { %481 = vsyncpa [#allocation3], 1 }
 0x2a5   :  { %482 = vsyncpa [#allocation6], 1 }
 0x2a6   :  { %483 = vsyncpa [#allocation9], 1 }
 0x2a7   :  { %484 = vsyncpa [#allocation12], 1 }
 0x2a8   :  { %485 = vsyncpa [#allocation4], 1 }

</bundles_post_ra>
